<compile_context>
chip_gen: v6e
topology: v6e:2x2x1
jax: 0.10.0
libtpu: 0.0.40
codegen_flags: <defaults>
</compile_context>

<pallas_src>
import functools

import jax
import jax.numpy as jnp
from jax.experimental import pallas as pl
from jax.experimental.pallas import tpu as pltpu

_NEG = -1e30  # large *finite* negative: exp() underflows to 0.0, no inf-inf NaNs


def _round_up(v, m):
    return (v + m - 1) // m * m


def _vmem_cap_bytes():
    """~75% of physical VMEM on this generation; conservative fallback."""
    try:
        info = pltpu.get_tpu_info()
        cap = getattr(info, "vmem_capacity_bytes", None)
        if cap:
            return int(0.75 * int(cap))
    except Exception:
        pass
    return 48 * 2**20


def _sinkhorn_kernel(x_ref, y_ref, cost_ref, pi_ref, c_ref, *,
                     eps, max_iter, thresh, p1, p2):
    x = x_ref[...]                       # (N, P1p, D) f32, zero-padded rows
    y = y_ref[...]                       # (N, P2p, D) f32, zero-padded rows
    N, P1p, _ = x.shape
    P2p = y.shape[1]

    inv_eps = jnp.float32(1.0 / eps)
    eps_f = jnp.float32(eps)

    # ---- cost matrix on the MXU: C = ||x||^2 + ||y||^2 - 2 x.y^T (== |x-y|^2) ----
    xy = jnp.einsum('bid,bjd->bij', x, y, preferred_element_type=jnp.float32)
    x2 = jnp.sum(x * x, axis=-1)         # (N, P1p)
    y2 = jnp.sum(y * y, axis=-1)         # (N, P2p)
    C = jnp.maximum(x2[:, :, None] + y2[:, None, :] - 2.0 * xy, 0.0)

    # Validity masks for the padded region (real extents p1 x p2).
    i_idx = jax.lax.broadcasted_iota(jnp.int32, (P1p, P2p), 0)
    j_idx = jax.lax.broadcasted_iota(jnp.int32, (P1p, P2p), 1)
    valid = jnp.logical_and(i_idx < p1, j_idx < p2)                    # (P1p, P2p)
    f_valid = jax.lax.broadcasted_iota(jnp.int32, (1, P1p), 1) < p1    # (1, P1p)
    g_valid = jax.lax.broadcasted_iota(jnp.int32, (1, P2p), 1) < p2    # (1, P2p)

    # K = -C/eps stored in the C output ref for the loop's duration; padded
    # entries pushed to a huge finite negative so exp -> 0 exactly.  C itself
    # is reconstructed at the epilogue (saves one resident (N,P1p,P2p) slab).
    c_ref[...] = jnp.where(valid[None, :, :], C * (-inv_eps), jnp.float32(_NEG))

    # log of the uniform marginals, matching torch.log(1/P + 1e-8)
    log_mu = jnp.log(jnp.float32(1.0 / p1 + 1e-8))
    log_nu = jnp.log(jnp.float32(1.0 / p2 + 1e-8))

    def lse(m, axis):
        mx = jnp.max(m, axis=axis, keepdims=True)
        s = jnp.sum(jnp.exp(m - mx), axis=axis, keepdims=True)
        return jnp.squeeze(jnp.log(s) + mx, axis=axis)

    def cond(state):
        it, _, _, err = state
        return jnp.logical_and(it < max_iter, err >= thresh)

    def body(state):
        it, f, g, _ = state
        kv = c_ref[...]
        # Cancelled log-domain updates (the "+f"/"+g" terms of the PyTorch
        # formulation cancel algebraically):
        #   f <- log_mu - lse_j(K + g)        (f = u/eps)
        #   g <- log_nu - lse_i(K + f_new)    (g = v/eps)
        f_new = jnp.where(f_valid, log_mu - lse(kv + g[:, None, :], 2), 0.0)
        g_new = jnp.where(g_valid, log_nu - lse(kv + f_new[:, :, None], 1), 0.0)
        # err = mean over batch of sum_i |u_i - u1_i| = eps * sum|f_new - f| / N
        err = eps_f * jnp.sum(jnp.abs(f_new - f)) / N
        return (it + 1, f_new, g_new, err)

    f0 = jnp.zeros((N, P1p), jnp.float32)
    g0 = jnp.zeros((N, P2p), jnp.float32)
    state0 = (jnp.int32(0), f0, g0, jnp.float32(jnp.inf))
    _, f, g, _ = jax.lax.while_loop(cond, body, state0)

    # Epilogue (fused): transport plan, reconstructed cost matrix, OT cost.
    kv = c_ref[...]                                           # K
    pi = jnp.exp(kv + f[:, :, None] + g[:, None, :])          # padded -> exactly 0
    pi_ref[...] = pi
    c_out = jnp.where(valid[None, :, :], kv * (-eps_f), 0.0)  # C = -eps*K, masked
    c_ref[...] = c_out
    cost_ref[...] = jnp.sum(jnp.sum(pi * c_out, axis=2, keepdims=True), axis=1)


def sinkhorn_distance(x, y, *, eps=0.1, max_iter=100, reduction='none',
                      thresh=0.1):
    """JAX/Pallas equivalent of SinkhornDistance(eps, max_iter, reduction)(x, y)."""
    x = jnp.asarray(x, jnp.float32)
    y = jnp.asarray(y, jnp.float32)
    N, P1, D = x.shape
    P2 = y.shape[1]

    # Lane-dense padding: last dim of the (N, P1, P2) slabs (P2) to a multiple
    # of 128, second-to-last (P1) to a multiple of 8.
    P1p = _round_up(P1, 8)
    P2p = _round_up(P2, 128)
    xp = jnp.pad(x, ((0, 0), (0, P1p - P1), (0, 0)))
    yp = jnp.pad(y, ((0, 0), (0, P2p - P2), (0, 0)))

    # VMEM budget: 2 resident (N,P1p,P2p) slabs (pi, C-holding-K) plus ~2-3
    # transient loop/prologue slabs, inputs, potentials, and headroom.
    slab = N * P1p * P2p * 4
    small = 4 * (N * P1p * D + N * P2p * D + N * (P1p + P2p) + N)
    bytes_needed = small + 5 * slab + (2 << 20)
    vmem_limit = int(min(max(bytes_needed, 16 * 2**20), _vmem_cap_bytes()))

    kernel = functools.partial(_sinkhorn_kernel, eps=float(eps),
                               max_iter=int(max_iter), thresh=float(thresh),
                               p1=P1, p2=P2)
    cost2d, pi_p, c_p = pl.pallas_call(
        kernel,
        out_shape=(
            jax.ShapeDtypeStruct((N, 1), jnp.float32),          # cost per batch
            jax.ShapeDtypeStruct((N, P1p, P2p), jnp.float32),   # pi (padded)
            jax.ShapeDtypeStruct((N, P1p, P2p), jnp.float32),   # C  (padded)
        ),
        in_specs=[
            pl.BlockSpec(memory_space=pltpu.MemorySpace.VMEM),
            pl.BlockSpec(memory_space=pltpu.MemorySpace.VMEM),
        ],
        out_specs=(
            pl.BlockSpec(memory_space=pltpu.MemorySpace.VMEM),
            pl.BlockSpec(memory_space=pltpu.MemorySpace.VMEM),
            pl.BlockSpec(memory_space=pltpu.MemorySpace.VMEM),
        ),
        compiler_params=pltpu.CompilerParams(vmem_limit_bytes=vmem_limit),
    )(xp, yp)

    cost = cost2d[:, 0]                  # (N,)
    pi = pi_p[:, :P1, :P2]
    C = c_p[:, :P1, :P2]
    if reduction == 'mean':
        cost = cost.mean()
    elif reduction == 'sum':
        cost = cost.sum()
    return cost, pi, C


if __name__ == "__main__":
    key = jax.random.PRNGKey(0)
    kx, ky = jax.random.split(key)
    # Small point clouds: batch=2, P1=8 / P2=16 points, feature dim D=4.
    x = jax.random.normal(kx, (2, 8, 4), dtype=jnp.float32)
    y = jax.random.normal(ky, (2, 16, 4), dtype=jnp.float32)

    cost, pi, C = sinkhorn_distance(x, y, eps=0.1, max_iter=100,
                                    reduction='none')
    jax.block_until_ready((cost, pi, C))
    assert cost.shape == (2,)
    assert pi.shape == (2, 8, 16)
    assert C.shape == (2, 8, 16)
    assert bool(jnp.isfinite(cost).all())
    assert bool(jnp.isfinite(pi).all())
    assert bool(jnp.isfinite(C).all())
    # Marginal sanity: rows of pi should sum to ~1/P1 per point.
    assert bool(jnp.allclose(pi.sum(axis=(1, 2)), 1.0, atol=5e-2))
    print("KERNEL_OK")
</pallas_src>

<mosaic_0001>
module attributes {stable_mosaic.version = 11 : i64} {
  func.func @_sinkhorn_kernel(%arg0: memref<2x8x4xf32, #tpu.memory_space<vmem>>, %arg1: memref<2x128x4xf32, #tpu.memory_space<vmem>>, %arg2: memref<2x1xf32, #tpu.memory_space<vmem>>, %arg3: memref<2x8x128xf32, #tpu.memory_space<vmem>>, %arg4: memref<2x8x128xf32, #tpu.memory_space<vmem>>) attributes {dimension_semantics = [], scalar_prefetch = 0 : i64, scratch_operands = 0 : i64, tpu.core_type = #tpu.core_type<tc>} {
    %c0 = arith.constant 0 : index
    %c0_0 = arith.constant 0 : index
    %c0_1 = arith.constant 0 : index
    %0 = vector.load %arg0[%c0, %c0_0, %c0_1] : memref<2x8x4xf32, #tpu.memory_space<vmem>>, vector<2x8x4xf32>
    %c0_2 = arith.constant 0 : index
    %c0_3 = arith.constant 0 : index
    %c0_4 = arith.constant 0 : index
    %1 = vector.load %arg1[%c0_2, %c0_3, %c0_4] : memref<2x128x4xf32, #tpu.memory_space<vmem>>, vector<2x128x4xf32>
    "tpu.trace_start"() <{level = 10 : i32, message = "bid,bjd->bij"}> : () -> ()
    %cst = arith.constant dense<0.000000e+00> : vector<2x8x128xf32>
    %2 = tpu.matmul %0, %1, %cst {dimension_numbers = #tpu.dot_dimension_numbers<[2], [2], [1], [1], [0, 0, 0, 1, 1, 1], [0], [0]>} : vector<2x8x4xf32>, vector<2x128x4xf32>, vector<2x8x128xf32> -> vector<2x8x128xf32>
    "tpu.trace_stop"() : () -> ()
    %3 = arith.mulf %0, %0 : vector<2x8x4xf32>
    %cst_5 = arith.constant dense<0.000000e+00> : vector<2x8xf32>
    %4 = vector.multi_reduction <add>, %3, %cst_5 [2] : vector<2x8x4xf32> to vector<2x8xf32>
    %5 = arith.mulf %1, %1 : vector<2x128x4xf32>
    %cst_6 = arith.constant dense<0.000000e+00> : vector<2x128xf32>
    %6 = vector.multi_reduction <add>, %5, %cst_6 [2] : vector<2x128x4xf32> to vector<2x128xf32>
    %7 = vector.shape_cast %4 : vector<2x8xf32> to vector<2x8x1xf32>
    %8 = vector.shape_cast %6 : vector<2x128xf32> to vector<2x1x128xf32>
    %9 = vector.broadcast %7 : vector<2x8x1xf32> to vector<2x8x128xf32>
    %10 = vector.broadcast %8 : vector<2x1x128xf32> to vector<2x8x128xf32>
    %11 = arith.addf %9, %10 : vector<2x8x128xf32>
    %cst_7 = arith.constant 2.000000e+00 : f32
    %12 = vector.broadcast %cst_7 : f32 to vector<2x8x128xf32>
    %13 = arith.mulf %12, %2 : vector<2x8x128xf32>
    %14 = arith.subf %11, %13 : vector<2x8x128xf32>
    %cst_8 = arith.constant 0.000000e+00 : f32
    %15 = vector.broadcast %cst_8 : f32 to vector<2x8x128xf32>
    %16 = arith.maximumf %14, %15 : vector<2x8x128xf32>
    %17 = tpu.iota {dimensions = array<i32: 0>} : vector<8x128xi32>
    %18 = tpu.iota {dimensions = array<i32: 1>} : vector<8x128xi32>
    %c8_i32 = arith.constant 8 : i32
    %19 = vector.broadcast %c8_i32 : i32 to vector<8x128xi32>
    %20 = arith.cmpi slt, %17, %19 : vector<8x128xi32>
    %c16_i32 = arith.constant 16 : i32
    %21 = vector.broadcast %c16_i32 : i32 to vector<8x128xi32>
    %22 = arith.cmpi slt, %18, %21 : vector<8x128xi32>
    %23 = arith.andi %20, %22 : vector<8x128xi1>
    %24 = tpu.iota {dimensions = array<i32: 1>} : vector<1x8xi32>
    %c8_i32_9 = arith.constant 8 : i32
    %25 = vector.broadcast %c8_i32_9 : i32 to vector<1x8xi32>
    %26 = arith.cmpi slt, %24, %25 : vector<1x8xi32>
    %27 = tpu.iota {dimensions = array<i32: 1>} : vector<1x128xi32>
    %c16_i32_10 = arith.constant 16 : i32
    %28 = vector.broadcast %c16_i32_10 : i32 to vector<1x128xi32>
    %29 = arith.cmpi slt, %27, %28 : vector<1x128xi32>
    %30 = vector.shape_cast %23 : vector<8x128xi1> to vector<1x8x128xi1>
    %cst_11 = arith.constant 0.000000e+00 : f32
    %cst_12 = arith.constant 1.000000e+01 : f32
    %31 = arith.subf %cst_11, %cst_12 : f32
    %32 = vector.broadcast %31 : f32 to vector<2x8x128xf32>
    %33 = arith.mulf %16, %32 : vector<2x8x128xf32>
    %cst_13 = arith.constant -1.000000e+30 : f32
    %34 = vector.shape_cast %30 : vector<1x8x128xi1> to vector<1x8x128xi1>
    %35 = vector.broadcast %34 : vector<1x8x128xi1> to vector<2x8x128xi1>
    %36 = vector.broadcast %cst_13 : f32 to vector<2x8x128xf32>
    %37 = arith.select %35, %33, %36 : vector<2x8x128xi1>, vector<2x8x128xf32>
    %c0_14 = arith.constant 0 : index
    %c0_15 = arith.constant 0 : index
    %c0_16 = arith.constant 0 : index
    %38 = vector.load %arg4[%c0_14, %c0_15, %c0_16] : memref<2x8x128xf32, #tpu.memory_space<vmem>>, vector<2x8x128xf32>
    tpu.vector_store %arg4[%c0_14, %c0_15, %c0_16], %37 {strides = array<i32>} : memref<2x8x128xf32, #tpu.memory_space<vmem>>, vector<2x8x128xf32>,
    %cst_17 = arith.constant 0.125000015 : f32
    %39 = math.log %cst_17 : f32
    %cst_18 = arith.constant 0.0625000075 : f32
    %40 = math.log %cst_18 : f32
    %cst_19 = arith.constant 0.000000e+00 : f32
    %41 = vector.broadcast %cst_19 : f32 to vector<2x8xf32>
    %cst_20 = arith.constant 0.000000e+00 : f32
    %42 = vector.broadcast %cst_20 : f32 to vector<2x128xf32>
    %cst_21 = arith.constant 1.000000e-01 : f32
    %c0_i32 = arith.constant 0 : i32
    %cst_22 = arith.constant 0x7F800000 : f32
    %43:4 = scf.while (%arg5 = %c0_i32, %arg6 = %41, %arg7 = %42, %arg8 = %cst_22) : (i32, vector<2x8xf32>, vector<2x128xf32>, f32) -> (i32, vector<2x8xf32>, vector<2x128xf32>, f32) {
      %c100_i32 = arith.constant 100 : i32
      %67 = arith.cmpi slt, %arg5, %c100_i32 : i32
      %cst_39 = arith.constant 1.000000e-01 : f32
      %68 = arith.cmpf oge, %arg8, %cst_39 : f32
      %69 = arith.andi %67, %68 : i1
      scf.condition(%69) %arg5, %arg6, %arg7, %arg8 : i32, vector<2x8xf32>, vector<2x128xf32>, f32
    } do {
    ^bb0(%arg5: i32, %arg6: vector<2x8xf32>, %arg7: vector<2x128xf32>, %arg8: f32):
      %c0_39 = arith.constant 0 : index
      %c0_40 = arith.constant 0 : index
      %c0_41 = arith.constant 0 : index
      %67 = vector.load %arg4[%c0_39, %c0_40, %c0_41] : memref<2x8x128xf32, #tpu.memory_space<vmem>>, vector<2x8x128xf32>
      %68 = vector.shape_cast %arg7 : vector<2x128xf32> to vector<2x1x128xf32>
      %69 = vector.broadcast %68 : vector<2x1x128xf32> to vector<2x8x128xf32>
      %70 = arith.addf %67, %69 : vector<2x8x128xf32>
      %cst_42 = arith.constant dense<0xFF800000> : vector<2x8xf32>
      %71 = vector.multi_reduction <maximumf>, %70, %cst_42 [2] : vector<2x8x128xf32> to vector<2x8xf32>
      %72 = vector.shape_cast %71 : vector<2x8xf32> to vector<2x8x1xf32>
      %73 = vector.broadcast %72 : vector<2x8x1xf32> to vector<2x8x128xf32>
      %74 = arith.subf %70, %73 : vector<2x8x128xf32>
      %75 = math.exp %74 : vector<2x8x128xf32>
      %cst_43 = arith.constant dense<0.000000e+00> : vector<2x8xf32>
      %76 = vector.multi_reduction <add>, %75, %cst_43 [2] : vector<2x8x128xf32> to vector<2x8xf32>
      %77 = vector.shape_cast %76 : vector<2x8xf32> to vector<2x8x1xf32>
      %78 = math.log %77 : vector<2x8x1xf32>
      %79 = arith.addf %78, %72 : vector<2x8x1xf32>
      %80 = vector.shape_cast %79 : vector<2x8x1xf32> to vector<2x8xf32>
      %81 = vector.broadcast %39 : f32 to vector<2x8xf32>
      %82 = arith.subf %81, %80 : vector<2x8xf32>
      %cst_44 = arith.constant 0.000000e+00 : f32
      %83 = vector.shape_cast %26 : vector<1x8xi1> to vector<1x8xi1>
      %84 = vector.broadcast %83 : vector<1x8xi1> to vector<2x8xi1>
      %85 = vector.broadcast %cst_44 : f32 to vector<2x8xf32>
      %86 = arith.select %84, %82, %85 : vector<2x8xi1>, vector<2x8xf32>
      %87 = vector.shape_cast %86 : vector<2x8xf32> to vector<2x8x1xf32>
      %88 = vector.broadcast %87 : vector<2x8x1xf32> to vector<2x8x128xf32>
      %89 = arith.addf %67, %88 : vector<2x8x128xf32>
      %cst_45 = arith.constant dense<0xFF800000> : vector<2x128xf32>
      %90 = vector.multi_reduction <maximumf>, %89, %cst_45 [1] : vector<2x8x128xf32> to vector<2x128xf32>
      %91 = vector.shape_cast %90 : vector<2x128xf32> to vector<2x1x128xf32>
      %92 = vector.broadcast %91 : vector<2x1x128xf32> to vector<2x8x128xf32>
      %93 = arith.subf %89, %92 : vector<2x8x128xf32>
      %94 = math.exp %93 : vector<2x8x128xf32>
      %cst_46 = arith.constant dense<0.000000e+00> : vector<2x128xf32>
      %95 = vector.multi_reduction <add>, %94, %cst_46 [1] : vector<2x8x128xf32> to vector<2x128xf32>
      %96 = vector.shape_cast %95 : vector<2x128xf32> to vector<2x1x128xf32>
      %97 = math.log %96 : vector<2x1x128xf32>
      %98 = arith.addf %97, %91 : vector<2x1x128xf32>
      %99 = vector.shape_cast %98 : vector<2x1x128xf32> to vector<2x128xf32>
      %100 = vector.broadcast %40 : f32 to vector<2x128xf32>
      %101 = arith.subf %100, %99 : vector<2x128xf32>
      %cst_47 = arith.constant 0.000000e+00 : f32
      %102 = vector.shape_cast %29 : vector<1x128xi1> to vector<1x128xi1>
      %103 = vector.broadcast %102 : vector<1x128xi1> to vector<2x128xi1>
      %104 = vector.broadcast %cst_47 : f32 to vector<2x128xf32>
      %105 = arith.select %103, %101, %104 : vector<2x128xi1>, vector<2x128xf32>
      %106 = arith.subf %86, %arg6 : vector<2x8xf32>
      %107 = math.absf %106 : vector<2x8xf32>
      %108 = vector.shape_cast %107 : vector<2x8xf32> to vector<1x2x8xf32>
      %cst_48 = arith.constant dense<0.000000e+00> : vector<1xf32>
      %109 = vector.multi_reduction <add>, %108, %cst_48 [1, 2] : vector<1x2x8xf32> to vector<1xf32>
      %110 = vector.shape_cast %109 : vector<1xf32> to vector<1x1x1xf32>
      %111 = vector.extract %110[0, 0, 0] : f32 from vector<1x1x1xf32>
      %112 = arith.mulf %cst_21, %111 : f32
      %cst_49 = arith.constant 2.000000e+00 : f32
      %113 = arith.divf %112, %cst_49 : f32
      %c1_i32 = arith.constant 1 : i32
      %114 = arith.addi %arg5, %c1_i32 : i32
      scf.yield %114, %86, %105, %113 : i32, vector<2x8xf32>, vector<2x128xf32>, f32
    }
    %c0_23 = arith.constant 0 : index
    %c0_24 = arith.constant 0 : index
    %c0_25 = arith.constant 0 : index
    %44 = vector.load %arg4[%c0_23, %c0_24, %c0_25] : memref<2x8x128xf32, #tpu.memory_space<vmem>>, vector<2x8x128xf32>
    %45 = vector.shape_cast %43#1 : vector<2x8xf32> to vector<2x8x1xf32>
    %46 = vector.broadcast %45 : vector<2x8x1xf32> to vector<2x8x128xf32>
    %47 = arith.addf %44, %46 : vector<2x8x128xf32>
    %48 = vector.shape_cast %43#2 : vector<2x128xf32> to vector<2x1x128xf32>
    %49 = vector.broadcast %48 : vector<2x1x128xf32> to vector<2x8x128xf32>
    %50 = arith.addf %47, %49 : vector<2x8x128xf32>
    %51 = math.exp %50 : vector<2x8x128xf32>
    %c0_26 = arith.constant 0 : index
    %c0_27 = arith.constant 0 : index
    %c0_28 = arith.constant 0 : index
    %52 = vector.load %arg3[%c0_26, %c0_27, %c0_28] : memref<2x8x128xf32, #tpu.memory_space<vmem>>, vector<2x8x128xf32>
    tpu.vector_store %arg3[%c0_26, %c0_27, %c0_28], %51 {strides = array<i32>} : memref<2x8x128xf32, #tpu.memory_space<vmem>>, vector<2x8x128xf32>,
    %53 = vector.shape_cast %23 : vector<8x128xi1> to vector<1x8x128xi1>
    %cst_29 = arith.constant 0.000000e+00 : f32
    %cst_30 = arith.constant 1.000000e-01 : f32
    %54 = arith.subf %cst_29, %cst_30 : f32
    %55 = vector.broadcast %54 : f32 to vector<2x8x128xf32>
    %56 = arith.mulf %44, %55 : vector<2x8x128xf32>
    %cst_31 = arith.constant 0.000000e+00 : f32
    %57 = vector.shape_cast %53 : vector<1x8x128xi1> to vector<1x8x128xi1>
    %58 = vector.broadcast %57 : vector<1x8x128xi1> to vector<2x8x128xi1>
    %59 = vector.broadcast %cst_31 : f32 to vector<2x8x128xf32>
    %60 = arith.select %58, %56, %59 : vector<2x8x128xi1>, vector<2x8x128xf32>
    %c0_32 = arith.constant 0 : index
    %c0_33 = arith.constant 0 : index
    %c0_34 = arith.constant 0 : index
    %61 = vector.load %arg4[%c0_32, %c0_33, %c0_34] : memref<2x8x128xf32, #tpu.memory_space<vmem>>, vector<2x8x128xf32>
    tpu.vector_store %arg4[%c0_32, %c0_33, %c0_34], %60 {strides = array<i32>} : memref<2x8x128xf32, #tpu.memory_space<vmem>>, vector<2x8x128xf32>,
    %62 = arith.mulf %51, %60 : vector<2x8x128xf32>
    %cst_35 = arith.constant dense<0.000000e+00> : vector<2x8xf32>
    %63 = vector.multi_reduction <add>, %62, %cst_35 [2] : vector<2x8x128xf32> to vector<2x8xf32>
    %64 = vector.shape_cast %63 : vector<2x8xf32> to vector<2x8x1xf32>
    %cst_36 = arith.constant dense<0.000000e+00> : vector<2x1xf32>
    %65 = vector.multi_reduction <add>, %64, %cst_36 [1] : vector<2x8x1xf32> to vector<2x1xf32>
    %c0_37 = arith.constant 0 : index
    %c0_38 = arith.constant 0 : index
    %66 = vector.load %arg2[%c0_37, %c0_38] : memref<2x1xf32, #tpu.memory_space<vmem>>, vector<2x1xf32>
    tpu.vector_store %arg2[%c0_37, %c0_38], %65 {strides = array<i32>} : memref<2x1xf32, #tpu.memory_space<vmem>>, vector<2x1xf32>,
    return
  }
}

</mosaic_0001>

<bundles_post_ra>
// kernel: tpu_custom_call.1
= control target key start
LH: loop header
LB: loop body
LE: loop exit
PB: predicated region body
PF: predicated region fallthrough
CT: control target
= control target key end

     0   :  { %10 = vsyncpa [#allocation3], 0  ;;  %s1753_s0 = inlined_call_operand.vmem [shape: f32[2,8,4], index: 0, kind: input, shape index: {}]   ;;  %s1754_s1 = inlined_call_operand.vmem [shape: f32[2,128,4], index: 1, kind: input, shape index: {}]   ;;  %s1755_s2 = inlined_call_operand.vmem [shape: f32[2,1], index: 2, kind: output, shape index: {0}]   ;;  %s1756_s3 = inlined_call_operand.hbm [shape: f32[2,8,128], index: 3, kind: output, shape index: {1}]   ;;  %s1757_s4 = inlined_call_operand.hbm [shape: f32[2,8,128], index: 4, kind: output, shape index: {2}]  }
   0x1   :  { %11 = vsyncpa [#allocation5], 0  ;;  %v1291_v0 = vld [vmem:[%s1754_s1 + $0x78] sm:$0xff]  ;;  %vm50_vm0 = vcmask 31744   ;;  %v1256_v2 = vmov 0.0   ;;  %v1303_v3 = vld [vmem:[%s1754_s1 + $0x80] sm:$0xff] }
   0x2   :  { %v1296_v1 = vld [vmem:[%s1754_s1 + $0xf8] sm:$0xff]  ;;  %1065 = vmatprep.subr.mxu0 %v1256_v2  ;;  %1100 = vmatprep.subr.mxu1 %v1256_v2  ;;  %v1312_v4 = vld [vmem:[%s1754_s1 + $0x70] sm:$0xff]  ;;  %v317_v5 = vmul.f32 %v1303_v3, %v1303_v3  ;;  %v1319_v6 = vld [vmem:[%s1754_s1] sm:$0xff]  ;;  %vm1257_vm1 = vmmov 0   ;;  %vm651_vm2 = vcmask 1041409   ;;  %vm472_vm4 = vcmask 130112  }
   0x3   :  { %1066 = vmatpush3.xpose.msk.msra.mxu0 %vm50_vm0, %v1291_v0  ;;  %1101 = vmatpush3.xpose.msk.msra.mxu1 %vm50_vm0, %v1296_v1  ;;  %v1326_v7 = vld [vmem:[%s1754_s1 + $0xf0] sm:$0xff]  ;;  %v301_v8 = vmul.f32 %v1319_v6, %v1319_v6  ;;  %v1333_v9 = vld [vmem:[%s1754_s1 + $0x88] sm:$0xff]  ;;  %v1380_v21 = vld [vmem:[%s1754_s1 + $0x98] sm:$0xff]  ;;  %vm479_vm5 = vcmask 195712   ;;  %vm486_vm6 = vcmask 261312   ;;  %vm493_vm7 = vcmask 326912  }
   0x4   :  { %1067 = vmatprep.subr.mxu0 %v1256_v2  ;;  %1102 = vmatprep.subr.mxu1 %v1256_v2  ;;  %v1338_v10 = vld [vmem:[%s1754_s1 + $0x8] sm:$0xff]  ;;  %v381_v11 = vsel %vm50_vm0, %v317_v5, 0.0  ;;  %v318_v12 = vmul.f32 %v1333_v9, %v1333_v9  ;;  %v1346_v13 = vld [vmem:[%s1754_s1 + $0x90] sm:$0xff]  ;;  %v320_v25 = vmul.f32 %v1380_v21, %v1380_v21  ;;  %v1395_v26 = vld [vmem:[%s1754_s1 + $0x18] sm:$0xff]  ;;  %vm500_vm8 = vcmask 392512  }
   0x5   :  { %1097 = vmatprep.mubr.msk.f32.mxu0 %vm1257_vm1, %v1256_v2  ;;  %1132 = vmatprep.mubr.msk.f32.mxu1 %vm1257_vm1, %v1256_v2  ;;  %v333_v14 = vsel %vm50_vm0, %v301_v8, 0.0  ;;  %v302_v15 = vmul.f32 %v1338_v10, %v1338_v10  ;;  %v319_v17 = vmul.f32 %v1346_v13, %v1346_v13  ;;  %v1363_v18 = vld [vmem:[%s1754_s1 + $0x10] sm:$0xff]  ;;  %v1370_v19 = vld [vmem:[%s1754_s1 + $0x68] sm:$0xff]  ;;  %v1402_v27 = vld [vmem:[%s1754_s1 + $0x60] sm:$0xff]  ;;  %v304_v31 = vmul.f32 %v1395_v26, %v1395_v26 }
   0x6   :  { %382 = vadd.xlane.f32.xlu1 %v381_v11  ;;  %v384_v16 = vsel %vm50_vm0, %v318_v12, 0.0  ;;  %v1375_v20 = vld [vmem:[%s1754_s1 + $0xe8] sm:$0xff]  ;;  %334 = vadd.xlane.f32.xlu0 %v333_v14  ;;  %v303_v23 = vmul.f32 %v1363_v18, %v1363_v18  ;;  %v1407_v28 = vld [vmem:[%s1754_s1 + $0xe0] sm:$0xff]  ;;  %v390_v32 = vsel %vm50_vm0, %v320_v25, 0.0  ;;  %v1434_v35 = vld [vmem:[%s1754_s1 + $0x58] sm:$0xff]  ;;  %vm507_vm9 = vcmask 458112  }
   0x7   :  { %1068 = vmatpush3.xpose.msk.msra.mxu0 %vm50_vm0, %v1312_v4  ;;  %1103 = vmatpush3.xpose.msk.msra.mxu1 %vm50_vm0, %v1326_v7  ;;  %v336_v22 = vsel %vm50_vm0, %v302_v15, 0.0  ;;  %v387_v24 = vsel %vm50_vm0, %v319_v17, 0.0  ;;  %v1412_v29 = vld [vmem:[%s1754_s1 + $0xa0] sm:$0xff]  ;;  %v1439_v36 = vld [vmem:[%s1754_s1 + $0xd8] sm:$0xff]  ;;  %v1444_v37 = vld [vmem:[%s1754_s1 + $0xa8] sm:$0xff]  ;;  %v342_v38 = vsel %vm50_vm0, %v304_v31, 0.0 }
   0x8   :  { %1104 = vmatprep.subr.mxu1 %v1256_v2  ;;  %1069 = vmatprep.subr.mxu0 %v1256_v2  ;;  %v339_v30 = vsel %vm50_vm0, %v303_v23, 0.0  ;;  %v321_v33 = vmul.f32 %v1412_v29, %v1412_v29  ;;  %v1427_v34 = vld [vmem:[%s1754_s1 + $0x20] sm:$0xff]  ;;  %v322_v41 = vmul.f32 %v1444_v37, %v1444_v37  ;;  %v1459_v42 = vld [vmem:[%s1754_s1 + $0x28] sm:$0xff]  ;;  %v1466_v43 = vld [vmem:[%s1754_s1 + $0x50] sm:$0xff]  ;;  %vm514_vm10 = vcmask 523712  }
   0x9   :  { %v305_v39 = vmul.f32 %v1427_v34, %v1427_v34  ;;  %v44_v44 = vld [vmem:[%s1754_s1 + $0xd0] sm:$0xff]  ;;  %v306_v47 = vmul.f32 %v1459_v42, %v1459_v42  ;;  %v27_v51 = vld [vmem:[%s1754_s1 + $0x48] sm:$0xff]  ;;  %v41_v53 = vld [vmem:[%s1754_s1 + $0xb8] sm:$0xff]  ;;  %vm521_vm11 = vcmask 589312   ;;  %vm528_vm12 = vcmask 654912  }
   0xa   :  { %385 = vadd.xlane.f32.xlu1 %v384_v16  ;;  %337 = vadd.xlane.f32.xlu0 %v336_v22  ;;  %v393_v40 = vsel %vm50_vm0, %v321_v33, 0.0  ;;  %v40_v45 = vld [vmem:[%s1754_s1 + $0xb0] sm:$0xff]  ;;  %v396_v48 = vsel %vm50_vm0, %v322_v41, 0.0  ;;  %v43_v52 = vld [vmem:[%s1754_s1 + $0xc8] sm:$0xff]  ;;  %v25_v57 = vld [vmem:[%s1754_s1 + $0x38] sm:$0xff]  ;;  %v324_v58 = vmul.f32 %v41_v53, %v41_v53  ;;  %v310_v16 = vmul.f32 %v27_v51, %v27_v51 }
   0xb   :  { %1070 = vmatpush3.xpose.msk.msra.mxu0 %vm50_vm0, %v1370_v19  ;;  %1105 = vmatpush3.xpose.msk.msra.mxu1 %vm50_vm0, %v1375_v20  ;;  %v345_v46 = vsel %vm50_vm0, %v305_v39, 0.0  ;;  %v323_v49 = vmul.f32 %v40_v45, %v40_v45  ;;  %v24_v50 = vld [vmem:[%s1754_s1 + $0x30] sm:$0xff]  ;;  %v348_v54 = vsel %vm50_vm0, %v306_v47, 0.0  ;;  %v26_v59 = vld [vmem:[%s1754_s1 + $0x40] sm:$0xff]  ;;  %v308_v62 = vmul.f32 %v25_v57, %v25_v57 }
   0xc   :  { %1106 = vmatprep.subr.mxu1 %v1256_v2  ;;  %1071 = vmatprep.subr.mxu0 %v1256_v2  ;;  %v307_v55 = vmul.f32 %v24_v50, %v24_v50  ;;  %v42_v60 = vld [vmem:[%s1754_s1 + $0xc0] sm:$0xff]  ;;  %v402_v63 = vsel %vm50_vm0, %v324_v58, 0.0  ;;  %v309_v11 = vmul.f32 %v26_v59, %v26_v59  ;;  %v326_v14 = vmul.f32 %v43_v52, %v43_v52 }
   0xd   :  { %v399_v56 = vsel %vm50_vm0, %v323_v49, 0.0  ;;  %v325_v5 = vmul.f32 %v42_v60, %v42_v60  ;;  %v354_v8 = vsel %vm50_vm0, %v308_v62, 0.0  ;;  %v327_v22 = vmul.f32 %v44_v44, %v44_v44 }
   0xe   :  { %388 = vadd.xlane.f32.xlu1 %v387_v24  ;;  %340 = vadd.xlane.f32.xlu0 %v339_v30  ;;  %v351_v61 = vsel %vm50_vm0, %v307_v55, 0.0  ;;  %v357_v15 = vsel %vm50_vm0, %v309_v11, 0.0  ;;  %v408_v17 = vsel %vm50_vm0, %v326_v14, 0.0  ;;  %v360_v23 = vsel %vm50_vm0, %v310_v16, 0.0 }
   0xf   :  { %1072 = vmatpush3.xpose.msk.msra.mxu0 %vm50_vm0, %v1402_v27  ;;  %1107 = vmatpush3.xpose.msk.msra.mxu1 %vm50_vm0, %v1407_v28  ;;  %v405_v12 = vsel %vm50_vm0, %v325_v5, 0.0  ;;  %v311_v24 = vmul.f32 %v1466_v43, %v1466_v43  ;;  %v411_v25 = vsel %vm50_vm0, %v327_v22, 0.0  ;;  %v328_v30 = vmul.f32 %v1439_v36, %v1439_v36 }
  0x10   :  { %1108 = vmatprep.subr.mxu1 %v1256_v2  ;;  %1073 = vmatprep.subr.mxu0 %v1256_v2  ;;  %v461_v39 = vlaneseq  ;;  %vm535_vm13 = vcmask 720512   ;;  %vm542_vm14 = vcmask 786112   ;;  %vm549_vm15 = vcmask 851712  }
  0x11   :  { %v363_v31 = vsel %vm50_vm0, %v311_v24, 0.0  ;;  %v414_v33 = vsel %vm50_vm0, %v328_v30, 0.0  ;;  %vm563_vm1 = vcmask 982912  }
  0x12   :  { %391 = vadd.xlane.f32.xlu1 %v390_v32  ;;  %343 = vadd.xlane.f32.xlu0 %v342_v38  ;;  %v312_v32 = vmul.f32 %v1434_v35, %v1434_v35 }
  0x13   :  { %1074 = vmatpush3.xpose.msk.msra.mxu0 %vm50_vm0, %v1434_v35  ;;  %1109 = vmatpush3.xpose.msk.msra.mxu1 %vm50_vm0, %v1439_v36  ;;  %v329_v36 = vmul.f32 %v1407_v28, %v1407_v28  ;;  %v313_v35 = vmul.f32 %v1402_v27, %v1402_v27  ;;  %v330_v28 = vmul.f32 %v1375_v20, %v1375_v20 }
  0x14   :  { %1110 = vmatprep.subr.mxu1 %v1256_v2  ;;  %1075 = vmatprep.subr.mxu0 %v1256_v2  ;;  %v314_v27 = vmul.f32 %v1370_v19, %v1370_v19  ;;  %v331_v20 = vmul.f32 %v1326_v7, %v1326_v7  ;;  %v315_v19 = vmul.f32 %v1312_v4, %v1312_v4 }
  0x15   :  { %v332_v7 = vmul.f32 %v1296_v1, %v1296_v1  ;;  %v316_v4 = vmul.f32 %v1291_v0, %v1291_v0  ;;  %v17_v1 = vld [vmem:[%s1753_s0 + $0x8] sm:$0xff] }
  0x16   :  { %394 = vadd.xlane.f32.xlu1 %v393_v40  ;;  %346 = vadd.xlane.f32.xlu0 %v345_v46  ;;  %v1607_v40 = vand.u32 127, %v461_v39 }
  0x17   :  { %1076 = vmatpush3.xpose.msk.msra.mxu0 %vm50_vm0, %v1466_v43  ;;  %1111 = vmatpush3.xpose.msk.msra.mxu1 %vm50_vm0, %v44_v44  ;;  %v378_v0 = vsel %vm50_vm0, %v316_v4, 0.0 }
  0x18   :  { %1112 = vmatprep.subr.mxu1 %v1256_v2  ;;  %1077 = vmatprep.subr.mxu0 %v1256_v2  ;;  %vm685_vm3 = vcmp.lt.s32.totalorder %v1607_v40, 8  ;;  %v467_v58 = vadd.s32 4294967288, %v1607_v40  ;;  %v481_v5 = vadd.s32 4294967272, %v1607_v40  ;;  %v488_v16 = vadd.s32 4294967264, %v1607_v40 }
  0x1a   :  { %397 = vadd.xlane.f32.xlu1 %v396_v48  ;;  %349 = vadd.xlane.f32.xlu0 %v348_v54 }
  0x1b   :  { %1078 = vmatpush3.xpose.msk.msra.mxu0 %vm50_vm0, %v27_v51  ;;  %1113 = vmatpush3.xpose.msk.msra.mxu1 %vm50_vm0, %v43_v52 }
  0x1c   :  { %1114 = vmatprep.subr.mxu1 %v1256_v2  ;;  %1079 = vmatprep.subr.mxu0 %v1256_v2 }
  0x1e   :  { %400 = vadd.xlane.f32.xlu1 %v399_v56  ;;  %352 = vadd.xlane.f32.xlu0 %v351_v61 }
  0x1f   :  { %1080 = vmatpush3.xpose.msk.msra.mxu0 %vm50_vm0, %v26_v59  ;;  %1115 = vmatpush3.xpose.msk.msra.mxu1 %vm50_vm0, %v42_v60  ;;  %v474_v59 = vadd.s32 4294967280, %v1607_v40 }
  0x20   :  { %1116 = vmatprep.subr.mxu1 %v1256_v2  ;;  %1081 = vmatprep.subr.mxu0 %v1256_v2 }
  0x22   :  { %403 = vadd.xlane.f32.xlu1 %v402_v63  ;;  %355 = vadd.xlane.f32.xlu0 %v354_v8 }
  0x23   :  { %1082 = vmatpush3.xpose.msk.msra.mxu0 %vm50_vm0, %v25_v57  ;;  %1117 = vmatpush3.xpose.msk.msra.mxu1 %vm50_vm0, %v41_v53  ;;  %v1618_v57 = vshrl.u32 %v461_v39, 7 }
  0x24   :  { %1118 = vmatprep.subr.mxu1 %v1256_v2  ;;  %1083 = vmatprep.subr.mxu0 %v1256_v2 }
  0x25   :  { %v1624_v60 = vsub.s32 %v1607_v40, %v1618_v57  ;;  %v470_v61 = vsub.s32 %v467_v58, %v1618_v57  ;;  %v477_v8 = vsub.s32 %v474_v59, %v1618_v57 }
  0x26   :  { %406 = vadd.xlane.f32.xlu1 %v405_v12  ;;  %358 = vadd.xlane.f32.xlu0 %v357_v15 }
  0x27   :  { %1084 = vmatpush3.xpose.msk.msra.mxu0 %vm50_vm0, %v24_v50  ;;  %1119 = vmatpush3.xpose.msk.msra.mxu1 %vm50_vm0, %v40_v45 }
  0x28   :  { %1120 = vmatprep.subr.mxu1 %v1256_v2  ;;  %1085 = vmatprep.subr.mxu0 %v1256_v2 }
  0x2a   :  { %409 = vadd.xlane.f32.xlu1 %v408_v17  ;;  %361 = vadd.xlane.f32.xlu0 %v360_v23  ;;  %v484_v17 = vsub.s32 %v481_v5, %v1618_v57 }
  0x2b   :  { %1086 = vmatpush3.xpose.msk.msra.mxu0 %vm50_vm0, %v1459_v42  ;;  %1121 = vmatpush3.xpose.msk.msra.mxu1 %vm50_vm0, %v1444_v37  ;;  %v366_v37 = vsel %vm50_vm0, %v312_v32, 0.0  ;;  %v495_v32 = vadd.s32 4294967256, %v1607_v40 }
  0x2c   :  { %1122 = vmatprep.subr.mxu1 %v1256_v2  ;;  %1087 = vmatprep.subr.mxu0 %v1256_v2 }
  0x2e   :  { %412 = vadd.xlane.f32.xlu1 %v411_v25  ;;  %364 = vadd.xlane.f32.xlu0 %v363_v31 }
  0x2f   :  { %1088 = vmatpush3.xpose.msk.msra.mxu0 %vm50_vm0, %v1427_v34  ;;  %1123 = vmatpush3.xpose.msk.msra.mxu1 %vm50_vm0, %v1412_v29  ;;  %v417_v29 = vsel %vm50_vm0, %v329_v36, 0.0  ;;  %v369_v34 = vsel %vm50_vm0, %v313_v35, 0.0 }
  0x30   :  { %1124 = vmatprep.subr.mxu1 %v1256_v2  ;;  %1089 = vmatprep.subr.mxu0 %v1256_v2 }
  0x32   :  { %415 = vadd.xlane.f32.xlu1 %v414_v33  ;;  %367 = vadd.xlane.f32.xlu0 %v366_v37  ;;  %v491_v33 = vsub.s32 %v488_v16, %v1618_v57 }
  0x33   :  { %1090 = vmatpush3.xpose.msk.msra.mxu0 %vm50_vm0, %v1395_v26  ;;  %1125 = vmatpush3.xpose.msk.msra.mxu1 %vm50_vm0, %v1380_v21  ;;  %v420_v21 = vsel %vm50_vm0, %v330_v28, 0.0  ;;  %v372_v26 = vsel %vm50_vm0, %v314_v27, 0.0  ;;  %v502_v28 = vadd.s32 4294967248, %v1607_v40 }
  0x34   :  { %1126 = vmatprep.subr.mxu1 %v1256_v2  ;;  %1091 = vmatprep.subr.mxu0 %v1256_v2 }
  0x36   :  { %418 = vadd.xlane.f32.xlu1 %v417_v29  ;;  %370 = vadd.xlane.f32.xlu0 %v369_v34  ;;  %v498_v34 = vsub.s32 %v495_v32, %v1618_v57 }
  0x37   :  { %1092 = vmatpush3.xpose.msk.msra.mxu0 %vm50_vm0, %v1363_v18  ;;  %1127 = vmatpush3.xpose.msk.msra.mxu1 %vm50_vm0, %v1346_v13  ;;  %v423_v13 = vsel %vm50_vm0, %v331_v20, 0.0  ;;  %v375_v18 = vsel %vm50_vm0, %v315_v19, 0.0 }
  0x38   :  { %1128 = vmatprep.subr.mxu1 %v1256_v2  ;;  %1093 = vmatprep.subr.mxu0 %v1256_v2 }
  0x3a   :  { %421 = vadd.xlane.f32.xlu1 %v420_v21  ;;  %373 = vadd.xlane.f32.xlu0 %v372_v26 }
  0x3b   :  { %1094 = vmatpush3.xpose.msk.msra.mxu0 %vm50_vm0, %v1338_v10  ;;  %1129 = vmatpush3.xpose.msk.msra.mxu1 %vm50_vm0, %v1333_v9  ;;  %v426_v9 = vsel %vm50_vm0, %v332_v7, 0.0  ;;  %v294_v10 = vmul.f32 %v17_v1, %v17_v1  ;;  %v509_v7 = vadd.s32 4294967240, %v1607_v40 }
  0x3c   :  { %1130 = vmatprep.subr.mxu1 %v1256_v2  ;;  %1095 = vmatprep.subr.mxu0 %v1256_v2  ;;  %v16_v2 = vld [vmem:[%s1753_s0] sm:$0xff]  ;;  %s1681_s0 = smov 0  }
  0x3e   :  { %424 = vadd.xlane.f32.xlu1 %v423_v13  ;;  %376 = vadd.xlane.f32.xlu0 %v375_v18  ;;  %v505_v18 = vsub.s32 %v502_v28, %v1618_v57 }
  0x3f   :  { %1096 = vmatpush3.xpose.msk.msra.mxu0 %vm50_vm0, %v1319_v6  ;;  %1131 = vmatpush3.xpose.msk.msra.mxu1 %vm50_vm0, %v1303_v3  ;;  %v293_v6 = vmul.f32 %v16_v2, %v16_v2  ;;  %v298_v3 = vsel %vm50_vm0, %v294_v10, 0.0  ;;  %v516_v10 = vadd.s32 4294967232, %v1607_v40 }
  0x41   :  { %v295_v38 = vsel %vm50_vm0, %v293_v6, 0.0 }
  0x42   :  { %1098 = vmatmul.mubr.msk.f32.vlgmr.msra.gmra.mxu0 %vm50_vm0, %v16_v2  ;;  %1133 = vmatmul.mubr.msk.f32.vlgmr.msra.gmra.mxu1 %vm50_vm0, %v17_v1  ;;  %vm556_vm0 = vcmask 917312  }
  0x43   :  { %427 = vadd.xlane.f32.xlu1 %v426_v9  ;;  %379 = vadd.xlane.f32.xlu0 %v378_v0  ;;  %v512_v0 = vsub.s32 %v509_v7, %v1618_v57 }
  0x47   :  { %299 = vadd.xlane.f32.xlu1 %v298_v3  ;;  %296 = vadd.xlane.f32.xlu0 %v295_v38 }
  0x8f   :  { %v383_v41 = vpop.xlane.xlu1 %382  ;;  %v335_v42 = vpop.xlane.xlu0 %334 }
  0x90   :  { %v575_v11 = vrot.slane %v383_v41, %v1624_v60  ;;  %v466_v12 = vrot.slane %v335_v42, %v1624_v60 }
  0x93   :  { %v386_v43 = vpop.xlane.xlu1 %385  ;;  %v338_v44 = vpop.xlane.xlu0 %337 }
  0x94   :  { %v579_v14 = vrot.slane %v386_v43, %v470_v61  ;;  %v471_v15 = vrot.slane %v338_v44, %v470_v61  ;;  %v523_v43 = vadd.s32 4294967224, %v1607_v40  ;;  %v519_v44 = vsub.s32 %v516_v10, %v1618_v57 }
  0x96   :  { %v580_v30 = vsel %vm472_vm4, %v579_v14, %v575_v11  ;;  %v473_v31 = vsel %vm472_vm4, %v471_v15, %v466_v12  ;;  %vm570_vm4 = vcmask 1048512  }
  0x97   :  { %v389_v45 = vpop.xlane.xlu1 %388  ;;  %v341_v46 = vpop.xlane.xlu0 %340 }
  0x98   :  { %v584_v22 = vrot.slane %v389_v45, %v477_v8  ;;  %v478_v23 = vrot.slane %v341_v46, %v477_v8 }
  0x9a   :  { %v585_v35 = vsel %vm479_vm5, %v584_v22, %v580_v30  ;;  %v480_v29 = vsel %vm479_vm5, %v478_v23, %v473_v31  ;;  %v551_v23 = vadd.s32 4294967192, %v1607_v40  ;;  %vm683_vm5 = vcmp.lt.s32.totalorder %v1607_v40, 16 }
  0x9b   :  { %v392_v47 = vpop.xlane.xlu1 %391  ;;  %v344_v48 = vpop.xlane.xlu0 %343 }
  0x9c   :  { %v589_v36 = vrot.slane %v392_v47, %v484_v17  ;;  %v485_v37 = vrot.slane %v344_v48, %v484_v17 }
  0x9e   :  { %v590_v19 = vsel %vm486_vm6, %v589_v36, %v585_v35  ;;  %v487_v13 = vsel %vm486_vm6, %v485_v37, %v480_v29  ;;  %v554_v36 = vsub.s32 %v551_v23, %v1618_v57 }
  0x9f   :  { %v395_v49 = vpop.xlane.xlu1 %394  ;;  %v347_v50 = vpop.xlane.xlu0 %346 }
  0xa0   :  { %v594_v27 = vrot.slane %v395_v49, %v491_v33  ;;  %v492_v21 = vrot.slane %v347_v50, %v491_v33  ;;  %v530_v49 = vadd.s32 4294967216, %v1607_v40  ;;  %v526_v50 = vsub.s32 %v523_v43, %v1618_v57 }
  0xa1   :  { %v558_v33 = vadd.s32 4294967184, %v1607_v40 }
  0xa2   :  { %v595_v1 = vsel %vm493_vm7, %v594_v27, %v590_v19  ;;  %v494_v9 = vsel %vm493_vm7, %v492_v21, %v487_v13  ;;  %v565_v21 = vadd.s32 4294967176, %v1607_v40 }
  0xa3   :  { %v398_v51 = vpop.xlane.xlu1 %397  ;;  %v350_v52 = vpop.xlane.xlu0 %349 }
  0xa4   :  { %v599_v4 = vrot.slane %v398_v51, %v498_v34  ;;  %v499_v2 = vrot.slane %v350_v52, %v498_v34 }
  0xa6   :  { %v600_v41 = vsel %vm500_vm8, %v599_v4, %v595_v1  ;;  %v501_v42 = vsel %vm500_vm8, %v499_v2, %v494_v9 }
  0xa7   :  { %v1610_v53 = vpop.xlane.xlu1 %400  ;;  %v1612_v54 = vpop.xlane.xlu0 %352 }
  0xa8   :  { %v604_v6 = vrot.slane %v1610_v53, %v505_v18  ;;  %v506_v3 = vrot.slane %v1612_v54, %v505_v18  ;;  %v568_v18 = vsub.s32 %v565_v21, %v1618_v57 }
  0xaa   :  { %v605_v47 = vsel %vm507_vm9, %v604_v6, %v600_v41  ;;  %v508_v48 = vsel %vm507_vm9, %v506_v3, %v501_v42 }
  0xab   :  { %v1614_v55 = vpop.xlane.xlu1 %403  ;;  %v1616_v56 = vpop.xlane.xlu0 %355 }
  0xac   :  { %v609_v45 = vrot.slane %v1614_v55, %v512_v0  ;;  %v513_v46 = vrot.slane %v1616_v56, %v512_v0  ;;  %v537_v55 = vadd.s32 4294967208, %v1607_v40  ;;  %v533_v56 = vsub.s32 %v530_v49, %v1618_v57 }
  0xae   :  { %v610_v58 = vsel %vm514_vm10, %v609_v45, %v605_v47  ;;  %v515_v59 = vsel %vm514_vm10, %v513_v46, %v508_v48 }
  0xaf   :  { %v1627_v62 = vpop.xlane.xlu1 %406  ;;  %v1629_v63 = vpop.xlane.xlu0 %358 }
  0xb0   :  { %v614_v51 = vrot.slane %v1627_v62, %v519_v44  ;;  %v520_v52 = vrot.slane %v1629_v63, %v519_v44  ;;  %v544_v62 = vadd.s32 4294967200, %v1607_v40  ;;  %v540_v63 = vsub.s32 %v537_v55, %v1618_v57 }
  0xb2   :  { %v615_v8 = vsel %vm521_vm11, %v614_v51, %v610_v58  ;;  %v522_v11 = vsel %vm521_vm11, %v520_v52, %v515_v59 }
  0xb3   :  { %v1637_v24 = vpop.xlane.xlu1 %409  ;;  %v1639_v25 = vpop.xlane.xlu0 %361 }
  0xb4   :  { %v619_v61 = vrot.slane %v1637_v24, %v526_v50  ;;  %v527_v5 = vrot.slane %v1639_v25, %v526_v50  ;;  %v547_v24 = vsub.s32 %v544_v62, %v1618_v57 }
  0xb6   :  { %v620_v17 = vsel %vm528_vm12, %v619_v61, %v615_v8  ;;  %v529_v22 = vsel %vm528_vm12, %v527_v5, %v522_v11  ;;  %v1677_v8 = vmov 0.0   ;;  %v1679_v11 = vmov 0.0  }
  0xb7   :  { %v413_v20 = vpop.xlane.xlu1 %412  ;;  %v365_v26 = vpop.xlane.xlu0 %364 }
  0xb8   :  { %v624_v12 = vrot.slane %v413_v20, %v533_v56  ;;  %v534_v14 = vrot.slane %v365_v26, %v533_v56  ;;  %v561_v20 = vsub.s32 %v558_v33, %v1618_v57 }
  0xba   :  { %v625_v31 = vsel %vm535_vm13, %v624_v12, %v620_v17  ;;  %v536_v32 = vsel %vm535_vm13, %v534_v14, %v529_v22 }
  0xbb   :  { %v416_v38 = vpop.xlane.xlu1 %415  ;;  %v368_v39 = vpop.xlane.xlu0 %367 }
  0xbc   :  { %v629_v30 = vrot.slane %v416_v38, %v540_v63  ;;  %v541_v25 = vrot.slane %v368_v39, %v540_v63 }
  0xbe   :  { %v630_v34 = vsel %vm542_vm14, %v629_v30, %v625_v31  ;;  %v543_v27 = vsel %vm542_vm14, %v541_v25, %v536_v32 }
  0xbf   :  { %v419_v53 = vpop.xlane.xlu1 %418  ;;  %v371_v54 = vpop.xlane.xlu0 %370 }
  0xc0   :  { %v634_v37 = vrot.slane %v419_v53, %v547_v24  ;;  %v548_v35 = vrot.slane %v371_v54, %v547_v24 }
  0xc2   :  { %v635_v13 = vsel %vm549_vm15, %v634_v37, %v630_v34  ;;  %v550_v7 = vsel %vm549_vm15, %v548_v35, %v543_v27 }
  0xc3   :  { %v422_v15 = vpop.xlane.xlu1 %421  ;;  %v374_v16 = vpop.xlane.xlu0 %373 }
  0xc4   :  { %v639_v26 = vrot.slane %v422_v15, %v554_v36  ;;  %v555_v19 = vrot.slane %v374_v16, %v554_v36 }
  0xc6   :  { %v640_v10 = vsel %vm556_vm0, %v639_v26, %v635_v13  ;;  %v557_v0 = vsel %vm556_vm0, %v555_v19, %v550_v7 }
  0xc7   :  { %v425_v29 = vpop.xlane.xlu1 %424  ;;  %v377_v28 = vpop.xlane.xlu0 %376 }
  0xc8   :  { %v644_v4 = vrot.slane %v425_v29, %v561_v20  ;;  %v562_v2 = vrot.slane %v377_v28, %v561_v20 }
  0xca   :  { %v645_v38 = vsel %vm563_vm1, %v644_v4, %v640_v10  ;;  %v564_v39 = vsel %vm563_vm1, %v562_v2, %v557_v0 }
  0xcc   :  { %v428_v1 = vpop.xlane.xlu1 %427  ;;  %v380_v9 = vpop.xlane.xlu0 %379 }
  0xcd   :  { %v649_v6 = vrot.slane %v428_v1, %v568_v18  ;;  %v569_v3 = vrot.slane %v380_v9, %v568_v18 }
  0xcf   :  { %v650_v41 = vsel %vm570_vm4, %v649_v6, %v645_v38  ;;  %v571_v43 = vsel %vm570_vm4, %v569_v3, %v564_v39 }
  0xd0   :  { %v300_v42 = vpop.xlane.xlu1 %299  ;;  %v297_v44 = vpop.xlane.xlu0 %296 }
  0xd1   :  { %v673_v47 = vadd.f32 %v650_v41, %v300_v42  ;;  %v672_v48 = vadd.f32 %v571_v43, %v297_v44 }
 0x102   :  { %v168_v45 = vpop.f32.mrf.mxu0  ;;  %v289_v46 = vpop.f32.mrf.mxu1 }
 0x103   :  { %v674_v49 = vmul.f32 2.0, %v168_v45  ;;  %v675_v50 = vmul.f32 2.0, %v289_v46 }
 0x104   :  { %v1099_v51 = vpop.f32.mrf.mxu0  ;;  %v1134_v52 = vpop.f32.mrf.mxu1 }
 0x105   :  { %v676_v53 = vsub.f32 %v672_v48, %v674_v49  ;;  %v677_v54 = vsub.f32 %v673_v47, %v675_v50 }
 0x107   :  { %v678_v58 = vmax.f32 %v676_v53, 0.0  ;;  %v679_v59 = vmax.f32 %v677_v54, 0.0 }
 0x109   :  { %v686_v55 = vmul.f32 -10.0, %v678_v58  ;;  %v687_v56 = vmul.f32 -10.0, %v679_v59 }
 0x10b   :  { %v690_v61 = vsel %vm683_vm5, %v686_v55, -1e+30  ;;  %v691_v5 = vsel %vm683_vm5, %v687_v56, -1e+30 }
 0x10c   :  { %692 = vst [vmem:[#allocation4] sm:$0xff] %v690_v61  ;;  %693 = vst [vmem:[#allocation4 + $0x8] sm:$0xff] %v691_v5 }
 0x10d LB: > { %v1258_v62 = vmov 1966171168   ;;  %v1693_v16 = vsub.s32 0, %v1618_v57  ;;  %vm842_vm6 = vcmask 58368   ;;  %v788_v43 = vsub.s32 1, %v1618_v57  ;;  %s857_s30 = sadd.s32 1, %s1254_s0   ;;  %s1254_s0 = sphi %s1681_s0, %s1760_s0   ;;  %v1250_v11 = vphi %v1679_v11, %v1759_v11   ;;  %v1246_v8 = vphi %v1677_v8, %v1758_v8  }
 0x10e   : > { %v709_v63 = vunpack.c.l.s4 %v1258_v62  ;;  %p699_p0 = scmp.lt.s32.totalorder %s857_s30, 100  ;;  %s1760_s0 = smov %s857_s30 }
 0x110   : > { %v710_v12 = vunpack.c.0.s8 %v709_v63 }
 0x112   : > { %v1689_v14 = vsub.s32 %v710_v12, %v1618_v57 }
 0x113   : > { %v705_v23 = vld [vmem:[#allocation4] sm:$0xff]  ;;  %v706_v25 = vld [vmem:[#allocation4 + $0x8] sm:$0xff] }
 0x114   : > { %v714_v15 = vrot.slane %v1246_v8, %v1689_v14 }
 0x116   : > { %v722_v17 = vrot.slane %v714_v15, %v1689_v14  ;;  %v715_v22 = vcombine.high %v714_v15, %v714_v15 }
 0x118   : > { %v733_v24 = vrot.slane %v722_v17, %v1693_v16  ;;  %v729_v30 = vrot.slane %v715_v22, %v1689_v14 }
 0x11a   : > { %v740_v31 = vadd.f32 %v733_v24, %v705_v23  ;;  %v737_v32 = vrot.slane %v729_v30, %v1693_v16 }
 0x11c   : > { %742 = vmax.xlane.f32.xlu0 %v740_v31  ;;  %v741_v33 = vadd.f32 %v737_v32, %v706_v25 }
 0x120   : > { %744 = vmax.xlane.f32.xlu0 %v741_v33 }
 0x1a5   : > { %v743_v36 = vpop.xlane.xlu0 %742 }
 0x1a6   : > { %v746_v37 = vsub.f32 %v740_v31, %v743_v36 }
 0x1a8   : > { %v748_v35 = vmul.f32 1.442695, %v746_v37 }
 0x1a9   : > { %v745_v29 = vpop.xlane.xlu0 %744 }
 0x1aa   : > { %1168 = vpow2.f32 %v748_v35  ;;  %v747_v28 = vsub.f32 %v741_v33, %v745_v29 }
 0x1ac   : > { %v750_v34 = vmul.f32 1.442695, %v747_v28 }
 0x1ae   : > { %1170 = vpow2.f32 %v750_v34 }
 0x1b7   : > { %v1169_v27 = vpop.eup %1168 }
 0x1b8   : > { %752 = vadd.xlane.f32.xlu1 %v1169_v27 }
 0x1bb   : > { %v1171_v21 = vpop.eup %1170 }
 0x1bc   : > { %754 = vadd.xlane.f32.xlu1 %v1171_v21 }
 0x241   : > { %v753_v20 = vpop.xlane.xlu1 %752 }
 0x242   : > { %1172 = vlog2.f32 %v753_v20 }
 0x245   : > { %v755_v26 = vpop.xlane.xlu1 %754 }
 0x246   : > { %1174 = vlog2.f32 %v755_v26 }
 0x24f   : > { %v1173_v19 = vpop.eup %1172 }
 0x250   : > { %v757_v13 = vmul.f32 0.6931472, %v1173_v19 }
 0x252   : > { %v760_v7 = vadd.f32 %v757_v13, %v743_v36 }
 0x253   : > { %v1175_v18 = vpop.eup %1174 }
 0x254   : > { %v759_v4 = vmul.f32 0.6931472, %v1175_v18  ;;  %v762_v1 = vsub.f32 -2.0794413, %v760_v7 }
 0x256   : > { %v761_v2 = vadd.f32 %v759_v4, %v745_v29  ;;  %v771_v10 = vrot.slane %v762_v1, %v1624_v60 }
 0x258   : > { %v763_v9 = vsub.f32 -2.0794413, %v761_v2 }
 0x25a   : > { %v775_v0 = vrot.slane %v763_v9, %v1624_v60 }
 0x25c   : > { %v776_v6 = vsel %vm651_vm2, %v775_v0, %v771_v10 }
 0x25d   : > { %v1704_v3 = vsel %vm685_vm3, %v776_v6, 0.0  }
 0x25e   : > { %v1708_v38 = vrot.slane %v1704_v3, %v1693_v16  ;;  %v840_v39 = vsub.f32 %v1704_v3, %v1250_v11  ;;  %v1714_v44 = vrot.slane %v1704_v3, %v788_v43 }
 0x260   : > { %784 = vbcast.lane.b32.xlu1 %v1708_v38, 256  ;;  %v841_v41 = vand.u32 2147483647, %v840_v39 }
 0x262   : > { %v843_v42 = vsel %vm842_vm6, %v841_v41, 0.0 }
 0x263   : > { %844 = vadd.xlane.f32.xlu0 %v843_v42 }
 0x279   : > { %791 = vbcast.lane.b32.xlu0 %v1714_v44, 256 }
 0x2d2   : > { %v785_v45 = vpop.permute.xlu1 %784 }
 0x2d3   : > { %v793_v46 = vadd.f32 %v785_v45, %v705_v23 }
 0x2d5   : > { %v795_v47 = vrot.slane %v793_v46, 4 }
 0x2d7   : > { %v796_v48 = vmax.f32 %v793_v46, %v795_v47 }
 0x2d9   : > { %v797_v49 = vrot.slane %v796_v48, 2 }
 0x2db   : > { %v798_v50 = vmax.f32 %v796_v48, %v797_v49 }
 0x2dd   : > { %v799_v51 = vrot.slane %v798_v50, 1 }
 0x2df   : > { %v800_v52 = vmax.f32 %v798_v50, %v799_v51 }
 0x2e1   : > { %v807_v53 = vsub.f32 %v793_v46, %v800_v52 }
 0x2e3   : > { %v809_v54 = vmul.f32 1.442695, %v807_v53 }
 0x2e5   : > { %1176 = vpow2.f32 %v809_v54 }
 0x2ec   : > { %v845_v58 = vpop.xlane.xlu0 %844 }
 0x2ed   : > { %v846_v59 = vrot.slane %v845_v58, 4 }
 0x2ef   : > { %v847_v55 = vadd.f32 %v846_v59, %v845_v58 }
 0x2f0   : > { %v792_v56 = vpop.permute.xlu0 %791 }
 0x2f1   : > { %v848_v61 = vrot.slane %v847_v55, 2  ;;  %v794_v5 = vadd.f32 %v792_v56, %v706_v25 }
 0x2f2   : > { %v1177_v23 = vpop.eup %1176 }
 0x2f3   : > { %v801_v8 = vrot.slane %v794_v5, 4  ;;  %v849_v11 = vadd.f32 %v848_v61, %v847_v55  ;;  %v813_v30 = vrot.slane %v1177_v23, 4 }
 0x2f5   : > { %v802_v62 = vmax.f32 %v794_v5, %v801_v8  ;;  %v850_v63 = vrot.slane %v849_v11, 1  ;;  %v814_v33 = vadd.f32 %v1177_v23, %v813_v30 }
 0x2f7   : > { %v803_v12 = vrot.slane %v802_v62, 2  ;;  %v851_v15 = vadd.f32 %v850_v63, %v849_v11  ;;  %v815_v36 = vrot.slane %v814_v33, 2  ;;  %v1759_v11 = vmov %v1704_v3 }
 0x2f9   : > { %v804_v17 = vmax.f32 %v802_v62, %v803_v12  ;;  %1135 = vpush %v851_v15  ;;  %v816_v37 = vadd.f32 %v815_v36, %v814_v33 }
 0x2fb   : > { %v805_v22 = vrot.slane %v804_v17, 1  ;;  %v817_v35 = vrot.slane %v816_v37, 1 }
 0x2fd   : > { %v806_v24 = vmax.f32 %v804_v17, %v805_v22  ;;  %v818_v28 = vadd.f32 %v817_v35, %v816_v37 }
 0x2ff   : > { %v808_v31 = vsub.f32 %v794_v5, %v806_v24 }
 0x301   : > { %v811_v32 = vmul.f32 1.442695, %v808_v31 }
 0x303   : > { %1178 = vpow2.f32 %v811_v32 }
 0x304   : > { %1180 = vlog2.f32 %v818_v28 }
 0x310   : > { %v1179_v25 = vpop.eup %1178 }
 0x311   : > { %v819_v29 = vrot.slane %v1179_v25, 4  ;;  %v1181_v19 = vpop.eup %1180 }
 0x312   : > { %v826_v13 = vmul.f32 0.6931472, %v1181_v19 }
 0x313   : > { %v820_v34 = vadd.f32 %v1179_v25, %v819_v29 }
 0x314   : > { %v829_v18 = vadd.f32 %v826_v13, %v800_v52 }
 0x315   : > { %v821_v27 = vrot.slane %v820_v34, 2 }
 0x316   : > { %v831_v1 = vsub.f32 -2.7725885, %v829_v18 }
 0x317   : > { %v822_v21 = vadd.f32 %v821_v27, %v820_v34 }
 0x319   : > { %v823_v20 = vrot.slane %v822_v21, 1 }
 0x31b   : > { %v824_v26 = vadd.f32 %v823_v20, %v822_v21 }
 0x31d   : > { %1182 = vlog2.f32 %v824_v26 }
 0x32a   : > { %v1183_v7 = vpop.eup %1182  ;;  %s1136_s5 = spop %1135 }
 0x32b   : > { %v828_v4 = vmul.f32 0.6931472, %v1183_v7  ;;  %s853_s6 = smul.f32 0.1, %s1136_s5 }
 0x32d   : > { %v830_v2 = vadd.f32 %v828_v4, %v806_v24  ;;  %s856_s7 = smul.f32 0.5, %s853_s6 }
 0x32f   : > { %v832_v9 = vsub.f32 -2.7725885, %v830_v2  ;;  %p700_p1 = scmp.ge.f32.partialorder %s856_s7, 0.1 }
 0x331   : > { %v837_v10 = vsel %vm651_vm2, %v832_v9, %v831_v1  ;;  %p701_p2 = pnand %p700_p1, %p699_p0 }
 0x332   : > { %v839_v0 = vsel %vm683_vm5, %v837_v10, 0.0   ;;  %865 = vbcast.lane.b32.xlu0 (%p701_p2), %v1708_v38, 256  ;;  %v858_v6 = vld [vmem:[#allocation4] sm:$0xff] (%p701_p2)  ;;  %v859_v42 = vld [vmem:[#allocation4 + $0x8] sm:$0xff] (%p701_p2)  ;;  %s1259_s8 = smov (%p701_p2), [#allocation2]   ;;  %s1260_s10 = smov (%p701_p2), [#allocation4]  }
 0x333   : > { %v1758_v8 = vmov %v839_v0  ;;  %704 = sbr.rel (!%p701_p2) target bundleno = 269 (0x10d), region = 51  ;;  %v917_v39 = vmul.f32 (%p701_p2), -0.1, %v858_v6  ;;  %v918_v43 = vmul.f32 (%p701_p2), -0.1, %v859_v42  ;;  %v883_v3 = vrot.slane (%p701_p2), %v839_v0, %v1689_v14  ;;  %s954_s9 = sshll.u32 (%p701_p2), %s1259_s8, 4  ;;  %s955_s9 = int_to_ptr.vmem [resolvable:$true] %s954_s9 }
 0x334   :  { %s966_s11 = sshll.u32 (%p701_p2), %s1260_s10, 4  ;;  %s1188_s12 = scalar_lea.vmem (%p701_p2), %s955_s9, 256  ;;  %s967_s11 = int_to_ptr.vmem [resolvable:$true] %s966_s11 }
 0x335   :  { %v919_v41 = vsel (%p701_p2), %vm683_vm5, %v917_v39, 0.0  ;;  %v920_v45 = vsel (%p701_p2), %vm683_vm5, %v918_v43, 0.0  ;;  %v891_v46 = vrot.slane (%p701_p2), %v883_v3, %v1689_v14  ;;  %v884_v57 = vcombine.high (%p701_p2), %v883_v3, %v883_v3  ;;  %p1189_p3 = scmp.ne.s32.totalorder (%p701_p2), %s955_s9, %s1188_s12  ;;  %p1193_p4 = scmp.lt.s32.totalorder (%p701_p2), %s955_s9, %s955_s9 }
 0x336   :  { %872 = vbcast.lane.b32.xlu0 (%p701_p2), %v1714_v44, 256  ;;  %921 = vst [vmem:[#allocation4] sm:$0xff] (%p701_p2), %v919_v41  ;;  %922 = vst [vmem:[#allocation4 + $0x8] sm:$0xff] (%p701_p2), %v920_v45  ;;  %p1194_p5 = scmp.lt.s32.totalorder (%p701_p2), %s1188_s12, %s1188_s12 }
 0x337   :  { %v902_v60 = vrot.slane (%p701_p2), %v891_v46, %v1693_v16  ;;  %v898_v38 = vrot.slane (%p701_p2), %v884_v57, %v1689_v14 }
 0x338   :  { %p1195_p6 = por %p1194_p5, %p1193_p4 }
 0x339   :  { %v906_v49 = vrot.slane %v898_v38, %v1693_v16 }
 0x33a   :  { %p1196_p7 = pnand %p1195_p6, %p1189_p3 }
 0x3a4   :  { %v866_v44 = vpop.permute.xlu0 %865 }
 0x3a5   :  { %v874_v47 = vadd.f32 %v866_v44, %v858_v6 }
 0x3a7   :  { %v909_v48 = vadd.f32 %v902_v60, %v874_v47 }
 0x3a8   :  { %v873_v50 = vpop.permute.xlu0 %872 }
 0x3a9   :  { %v911_v51 = vmul.f32 1.442695, %v909_v48  ;;  %v875_v52 = vadd.f32 %v873_v50, %v859_v42 }
 0x3ab   :  { %1184 = vpow2.f32 %v911_v51  ;;  %v910_v40 = vadd.f32 %v906_v49, %v875_v52 }
 0x3ad   :  { %v913_v53 = vmul.f32 1.442695, %v910_v40 }
 0x3af   :  { %1186 = vpow2.f32 %v913_v53 }
 0x3b8   :  { %v1185_v54 = vpop.eup %1184 }
 0x3b9   :  { %915 = vst [vmem:[#allocation2] sm:$0xff] %v1185_v54  ;;  %v923_v58 = vmul.f32 %v1185_v54, %v919_v41 }
 0x3bb   :  { %925 = vadd.xlane.f32.xlu1 %v923_v58 }
 0x3bc   :  { %v1187_v59 = vpop.eup %1186 }
 0x3bd   :  { %916 = vst [vmem:[#allocation2 + $0x8] sm:$0xff] %v1187_v59  ;;  %v924_v55 = vmul.f32 %v1187_v59, %v920_v45 }
 0x3bf   :  { %927 = vadd.xlane.f32.xlu1 %v924_v55 }
 0x3c0   :  { %1199 = shalt.err (!%p1196_p7)
}
 0x3c1   :  { %s1261_s13 = smov 128   ;;  %s1262_s14 = smov 8  }
 0x3c2   :  { %960 = dma.vmem_to_hbm [thread:$0]  %s955_s9, 256, %s1756_s3, [#allocation3], %s1261_s13, %s1261_s13, %s1262_s14  }
 0x3c3   :  { %s1208_s17 = scalar_lea.vmem %s967_s11, 256  ;;  %p1213_p9 = scmp.lt.s32.totalorder %s967_s11, %s967_s11 }
 0x3c4   :  { %p1209_p8 = scmp.ne.s32.totalorder %s967_s11, %s1208_s17  ;;  %p1214_p10 = scmp.lt.s32.totalorder %s1208_s17, %s1208_s17 }
 0x3c6   :  { %p1215_p11 = por %p1214_p10, %p1213_p9 }
 0x3c8   :  { %p1216_p12 = pnand %p1215_p11, %p1209_p8 }
 0x3ca   :  { %1219 = shalt.err (!%p1216_p12)
}
 0x3cb   :  { %972 = dma.vmem_to_hbm [thread:$0]  %s967_s11, 256, %s1757_s4, [#allocation5], %s1261_s13, %s1261_s13, %s1262_s14   ;;  %vm945_vm3 = vcmask 1024  }
 0x444   :  { %v926_v14 = vpop.xlane.xlu1 %925 }
 0x445   :  { %v929_v16 = vrot.slane %v926_v14, 4 }
 0x447   :  { %v930_v56 = vadd.f32 %v929_v16, %v926_v14 }
 0x448   :  { %v928_v61 = vpop.xlane.xlu1 %927 }
 0x449   :  { %v931_v5 = vrot.slane %v930_v56, 2  ;;  %v935_v8 = vrot.slane %v928_v61, 4 }
 0x44b   :  { %v932_v11 = vadd.f32 %v931_v5, %v930_v56  ;;  %v936_v62 = vadd.f32 %v935_v8, %v928_v61 }
 0x44d   :  { %v937_v63 = vrot.slane %v936_v62, 2  ;;  %v933_v12 = vrot.slane %v932_v11, 1 }
 0x44f   :  { %v938_v15 = vadd.f32 %v937_v63, %v936_v62  ;;  %v934_v22 = vadd.f32 %v933_v12, %v932_v11 }
 0x451   :  { %v939_v17 = vrot.slane %v938_v15, 1 }
 0x453   :  { %v940_v23 = vadd.f32 %v939_v17, %v938_v15 }
 0x455   :  { %v943_v24 = vsel %vm651_vm2, %v940_v23, %v934_v22 }
 0x456   :  { %946 = vst.msk [vmem:[%s1755_s2] sm:$0x3] %vm945_vm3, %v943_v24 }
 0x457   :  { %1240 = dma.done.wait [#allocation3], 256  }
 0x458   :  { %1241 = vsyncadd [#allocation3], 4294967040 }
 0x459   :  { %1242 = dma.done.wait [#allocation5], 256  }
 0x45a   :  { %1243 = vsyncadd [#allocation5], 4294967040 }
 0x45b   :  { %981 = vsyncpa [#allocation3], 1 }
 0x45c   :  { %982 = vsyncpa [#allocation5], 1 }

</bundles_post_ra>
